<compile_context>
chip_gen: v7x
topology: tpu7x:2x2x1
jax: 0.10.0
libtpu: 0.0.40
codegen_flags: <defaults>
</compile_context>

<pallas_src>
import functools

import jax
import jax.numpy as jnp
from jax.experimental import pallas as pl
from jax.experimental.pallas import tpu as pltpu


def _gene_mlp_kernel(x_ref, w1_ref, b1_ref, w2_ref, b2_ref, o_ref):
    """One block of TG genes; genes are on the lane dimension.

    x_ref : [B, D, TG]   w1_ref: [D, H, TG]   b1_ref: [1, H, TG]
    w2_ref: [H, O, TG]   b2_ref: [1, O, TG]   o_ref : [B, O, TG]
    """
    B, D, TG = x_ref.shape
    H = w1_ref.shape[1]
    O = w2_ref.shape[1]

    x = x_ref[...].astype(jnp.float32)        # [B, D, TG]
    w1 = w1_ref[...].astype(jnp.float32)      # [D, H, TG]

    # Layer 1 (VPU): h[b, j, g] = sum_d x[b, d, g] * w1[d, j, g] + b1[j, g].
    # D is tiny and static -> fully unrolled broadcast-FMA chain, dense in g.
    h = jnp.zeros((B, H, TG), jnp.float32)
    for d in range(D):
        h = h + x[:, d:d + 1, :] * w1[d:d + 1, :, :]      # [B,1,TG] * [1,H,TG]
    h = h + b1_ref[...].astype(jnp.float32)
    h = jnp.maximum(h, 0.0)                                # ReLU

    # Layer 2: y[b, o, g] = sum_j h[b, j, g] * w2[j, o, g] + b2[o, g].
    # One elementwise multiply + one sublane reduction (XLU) per output
    # channel instead of an H-long FMA chain.
    w2 = w2_ref[...].astype(jnp.float32)       # [H, O, TG]
    cols = []
    for o in range(O):
        yo = jnp.sum(h * w2[:, o, :][None, :, :], axis=1)  # [B, TG]
        cols.append(yo[:, None, :])                        # [B, 1, TG]
    y = jnp.concatenate(cols, axis=1)                      # [B, O, TG]
    y = y + b2_ref[...].astype(jnp.float32)

    o_ref[...] = y.astype(o_ref.dtype)


def _pick_gene_block(G, tg):
    """Lane-aligned gene block size TG and padded gene count Gp."""
    if G <= 128:
        return G, G                                 # block == full dim: legal
    n_blocks = pl.cdiv(G, tg)                       # grid steps
    TG = 128 * pl.cdiv(pl.cdiv(G, n_blocks), 128)   # balanced, 128-aligned
    TG = min(TG, tg)
    return TG, TG * pl.cdiv(G, TG)


@functools.partial(jax.jit, static_argnames=("tg",))
def gene_regressor_list(x, w1, b1, w2, b2, *, tg=1024):
    """x: [B, G, D]; per-gene params w1: [G, D, H], b1: [G, 1, H],
    w2: [G, H, O], b2: [G, 1, O].  Returns [B*O, G] (GeneRegressorList.forward)."""
    B, G, D = x.shape
    H = w1.shape[2]
    O = w2.shape[2]
    assert tg % 128 == 0 and tg >= 128

    # Gene-last relayout so genes sit on the lane dimension.  In a real
    # pipeline the weight relayout is done once at parameter-load time; here
    # it is a single fused transpose(+pad) pass per array.
    x_l = jnp.transpose(x, (0, 2, 1))         # [B, D, G]
    w1_l = jnp.transpose(w1, (1, 2, 0))       # [D, H, G]
    b1_l = jnp.transpose(b1, (1, 2, 0))       # [1, H, G]
    w2_l = jnp.transpose(w2, (1, 2, 0))       # [H, O, G]
    b2_l = jnp.transpose(b2, (1, 2, 0))       # [1, O, G]

    TG, Gp = _pick_gene_block(G, tg)
    if Gp != G:
        pad = Gp - G

        def _pad(a):
            return jnp.pad(a, [(0, 0)] * (a.ndim - 1) + [(0, pad)])

        x_l, w1_l, b1_l, w2_l, b2_l = map(_pad, (x_l, w1_l, b1_l, w2_l, b2_l))

    y = pl.pallas_call(
        _gene_mlp_kernel,
        out_shape=jax.ShapeDtypeStruct((B, O, Gp), x.dtype),
        grid_spec=pltpu.PrefetchScalarGridSpec(
            num_scalar_prefetch=0,
            grid=(Gp // TG,),                                    # TG genes/step
            in_specs=[
                pl.BlockSpec((B, D, TG), lambda g: (0, 0, g)),   # x
                pl.BlockSpec((D, H, TG), lambda g: (0, 0, g)),   # W1
                pl.BlockSpec((1, H, TG), lambda g: (0, 0, g)),   # b1
                pl.BlockSpec((H, O, TG), lambda g: (0, 0, g)),   # W2
                pl.BlockSpec((1, O, TG), lambda g: (0, 0, g)),   # b2
            ],
            out_specs=pl.BlockSpec((B, O, TG), lambda g: (0, 0, g)),
        ),
        compiler_params=pltpu.CompilerParams(
            dimension_semantics=("parallel",)),  # gene blocks shard across TCs
    )(x_l, w1_l, b1_l, w2_l, b2_l)               # [B, O, Gp]

    # PyTorch layout: out[b*O + o, g] = y[b, o, g]; genes-last makes it free.
    return y[..., :G].reshape(B * O, G)


def _reference(x, w1, b1, w2, b2):
    # Pure-JAX reference of the PyTorch forward.
    h = jnp.einsum("bgd,gdh->bgh", x, w1) + b1[:, 0][None]
    h = jnp.maximum(h, 0.0)
    y = jnp.einsum("bgh,gho->bgo", h, w2) + b2[:, 0][None]       # [B, G, O]
    B, G, O = y.shape
    return jnp.transpose(y, (0, 2, 1)).reshape(B * O, G)


if __name__ == "__main__":
    def _make(key, B, G, D, H, O):
        kx, k1, k2, k3, k4 = jax.random.split(key, 5)
        x = jax.random.normal(kx, (B, G, D), dtype=jnp.float32)
        w1 = jax.random.normal(k1, (G, D, H), dtype=jnp.float32) * 0.1
        b1 = jax.random.normal(k2, (G, 1, H), dtype=jnp.float32) * 0.1
        w2 = jax.random.normal(k3, (G, H, O), dtype=jnp.float32) * 0.1
        b2 = jax.random.normal(k4, (G, 1, O), dtype=jnp.float32) * 0.1
        return x, w1, b1, w2, b2

    key = jax.random.PRNGKey(0)
    k_small, k_big = jax.random.split(key)

    # Small shapes consistent with the module: batch=2, genes=8, in=16, hid=32.
    B, G, D, H, O = 2, 8, 16, 32, 1
    args = _make(k_small, B, G, D, H, O)
    out = jax.block_until_ready(gene_regressor_list(*args))
    ref = _reference(*args)
    assert out.shape == (B * O, G), out.shape
    assert jnp.allclose(out, ref, atol=1e-5, rtol=1e-5), "mismatch (small)"

    # Multi-block + padded path: 200 genes with TG=128 -> 2 gene blocks, O=2.
    B2, G2, D2, H2, O2 = 2, 200, 16, 32, 2
    args2 = _make(k_big, B2, G2, D2, H2, O2)
    out2 = jax.block_until_ready(gene_regressor_list(*args2, tg=128))
    ref2 = _reference(*args2)
    assert out2.shape == (B2 * O2, G2), out2.shape
    assert jnp.allclose(out2, ref2, atol=1e-4, rtol=1e-4), "mismatch (blocked)"

    print("KERNEL_OK")
</pallas_src>

<mosaic_0001>
module attributes {stable_mosaic.version = 11 : i64} {
  func.func @_gene_mlp_kernel(%arg0: i32, %arg1: memref<2x16x8xf32, #tpu.memory_space<vmem>>, %arg2: memref<16x32x8xf32, #tpu.memory_space<vmem>>, %arg3: memref<1x32x8xf32, #tpu.memory_space<vmem>>, %arg4: memref<32x1x8xf32, #tpu.memory_space<vmem>>, %arg5: memref<1x1x8xf32, #tpu.memory_space<vmem>>, %arg6: memref<2x1x8xf32, #tpu.memory_space<vmem>>) attributes {dimension_semantics = [#tpu.dimension_semantics<parallel>], iteration_bounds = array<i64: 1>, scalar_prefetch = 0 : i64, scratch_operands = 0 : i64, tpu.core_type = #tpu.core_type<tc>, window_params = [{transform_indices = @transform_0, window_bounds = array<i64: 2, 16, 8>}, {transform_indices = @transform_1, window_bounds = array<i64: 16, 32, 8>}, {transform_indices = @transform_2, window_bounds = array<i64: 1, 32, 8>}, {transform_indices = @transform_3, window_bounds = array<i64: 32, 1, 8>}, {transform_indices = @transform_4, window_bounds = array<i64: 1, 1, 8>}, {transform_indices = @transform_5, window_bounds = array<i64: 2, 1, 8>}]} {
    %c0 = arith.constant 0 : index
    %c0_0 = arith.constant 0 : index
    %c0_1 = arith.constant 0 : index
    %0 = vector.load %arg1[%c0, %c0_0, %c0_1] : memref<2x16x8xf32, #tpu.memory_space<vmem>>, vector<2x16x8xf32>
    %c0_2 = arith.constant 0 : index
    %c0_3 = arith.constant 0 : index
    %c0_4 = arith.constant 0 : index
    %1 = vector.load %arg2[%c0_2, %c0_3, %c0_4] : memref<16x32x8xf32, #tpu.memory_space<vmem>>, vector<16x32x8xf32>
    %cst = arith.constant 0.000000e+00 : f32
    %2 = vector.broadcast %cst : f32 to vector<2x32x8xf32>
    %3 = vector.extract_strided_slice %0 {offsets = [0, 0, 0], sizes = [2, 1, 8], strides = [1, 1, 1]} : vector<2x16x8xf32> to vector<2x1x8xf32>
    %4 = vector.extract_strided_slice %1 {offsets = [0, 0, 0], sizes = [1, 32, 8], strides = [1, 1, 1]} : vector<16x32x8xf32> to vector<1x32x8xf32>
    %5 = vector.broadcast %3 : vector<2x1x8xf32> to vector<2x32x8xf32>
    %6 = vector.broadcast %4 : vector<1x32x8xf32> to vector<2x32x8xf32>
    %7 = arith.mulf %5, %6 : vector<2x32x8xf32>
    %8 = arith.addf %2, %7 : vector<2x32x8xf32>
    %9 = vector.extract_strided_slice %0 {offsets = [0, 1, 0], sizes = [2, 1, 8], strides = [1, 1, 1]} : vector<2x16x8xf32> to vector<2x1x8xf32>
    %10 = vector.extract_strided_slice %1 {offsets = [1, 0, 0], sizes = [1, 32, 8], strides = [1, 1, 1]} : vector<16x32x8xf32> to vector<1x32x8xf32>
    %11 = vector.broadcast %9 : vector<2x1x8xf32> to vector<2x32x8xf32>
    %12 = vector.broadcast %10 : vector<1x32x8xf32> to vector<2x32x8xf32>
    %13 = arith.mulf %11, %12 : vector<2x32x8xf32>
    %14 = arith.addf %8, %13 : vector<2x32x8xf32>
    %15 = vector.extract_strided_slice %0 {offsets = [0, 2, 0], sizes = [2, 1, 8], strides = [1, 1, 1]} : vector<2x16x8xf32> to vector<2x1x8xf32>
    %16 = vector.extract_strided_slice %1 {offsets = [2, 0, 0], sizes = [1, 32, 8], strides = [1, 1, 1]} : vector<16x32x8xf32> to vector<1x32x8xf32>
    %17 = vector.broadcast %15 : vector<2x1x8xf32> to vector<2x32x8xf32>
    %18 = vector.broadcast %16 : vector<1x32x8xf32> to vector<2x32x8xf32>
    %19 = arith.mulf %17, %18 : vector<2x32x8xf32>
    %20 = arith.addf %14, %19 : vector<2x32x8xf32>
    %21 = vector.extract_strided_slice %0 {offsets = [0, 3, 0], sizes = [2, 1, 8], strides = [1, 1, 1]} : vector<2x16x8xf32> to vector<2x1x8xf32>
    %22 = vector.extract_strided_slice %1 {offsets = [3, 0, 0], sizes = [1, 32, 8], strides = [1, 1, 1]} : vector<16x32x8xf32> to vector<1x32x8xf32>
    %23 = vector.broadcast %21 : vector<2x1x8xf32> to vector<2x32x8xf32>
    %24 = vector.broadcast %22 : vector<1x32x8xf32> to vector<2x32x8xf32>
    %25 = arith.mulf %23, %24 : vector<2x32x8xf32>
    %26 = arith.addf %20, %25 : vector<2x32x8xf32>
    %27 = vector.extract_strided_slice %0 {offsets = [0, 4, 0], sizes = [2, 1, 8], strides = [1, 1, 1]} : vector<2x16x8xf32> to vector<2x1x8xf32>
    %28 = vector.extract_strided_slice %1 {offsets = [4, 0, 0], sizes = [1, 32, 8], strides = [1, 1, 1]} : vector<16x32x8xf32> to vector<1x32x8xf32>
    %29 = vector.broadcast %27 : vector<2x1x8xf32> to vector<2x32x8xf32>
    %30 = vector.broadcast %28 : vector<1x32x8xf32> to vector<2x32x8xf32>
    %31 = arith.mulf %29, %30 : vector<2x32x8xf32>
    %32 = arith.addf %26, %31 : vector<2x32x8xf32>
    %33 = vector.extract_strided_slice %0 {offsets = [0, 5, 0], sizes = [2, 1, 8], strides = [1, 1, 1]} : vector<2x16x8xf32> to vector<2x1x8xf32>
    %34 = vector.extract_strided_slice %1 {offsets = [5, 0, 0], sizes = [1, 32, 8], strides = [1, 1, 1]} : vector<16x32x8xf32> to vector<1x32x8xf32>
    %35 = vector.broadcast %33 : vector<2x1x8xf32> to vector<2x32x8xf32>
    %36 = vector.broadcast %34 : vector<1x32x8xf32> to vector<2x32x8xf32>
    %37 = arith.mulf %35, %36 : vector<2x32x8xf32>
    %38 = arith.addf %32, %37 : vector<2x32x8xf32>
    %39 = vector.extract_strided_slice %0 {offsets = [0, 6, 0], sizes = [2, 1, 8], strides = [1, 1, 1]} : vector<2x16x8xf32> to vector<2x1x8xf32>
    %40 = vector.extract_strided_slice %1 {offsets = [6, 0, 0], sizes = [1, 32, 8], strides = [1, 1, 1]} : vector<16x32x8xf32> to vector<1x32x8xf32>
    %41 = vector.broadcast %39 : vector<2x1x8xf32> to vector<2x32x8xf32>
    %42 = vector.broadcast %40 : vector<1x32x8xf32> to vector<2x32x8xf32>
    %43 = arith.mulf %41, %42 : vector<2x32x8xf32>
    %44 = arith.addf %38, %43 : vector<2x32x8xf32>
    %45 = vector.extract_strided_slice %0 {offsets = [0, 7, 0], sizes = [2, 1, 8], strides = [1, 1, 1]} : vector<2x16x8xf32> to vector<2x1x8xf32>
    %46 = vector.extract_strided_slice %1 {offsets = [7, 0, 0], sizes = [1, 32, 8], strides = [1, 1, 1]} : vector<16x32x8xf32> to vector<1x32x8xf32>
    %47 = vector.broadcast %45 : vector<2x1x8xf32> to vector<2x32x8xf32>
    %48 = vector.broadcast %46 : vector<1x32x8xf32> to vector<2x32x8xf32>
    %49 = arith.mulf %47, %48 : vector<2x32x8xf32>
    %50 = arith.addf %44, %49 : vector<2x32x8xf32>
    %51 = vector.extract_strided_slice %0 {offsets = [0, 8, 0], sizes = [2, 1, 8], strides = [1, 1, 1]} : vector<2x16x8xf32> to vector<2x1x8xf32>
    %52 = vector.extract_strided_slice %1 {offsets = [8, 0, 0], sizes = [1, 32, 8], strides = [1, 1, 1]} : vector<16x32x8xf32> to vector<1x32x8xf32>
    %53 = vector.broadcast %51 : vector<2x1x8xf32> to vector<2x32x8xf32>
    %54 = vector.broadcast %52 : vector<1x32x8xf32> to vector<2x32x8xf32>
    %55 = arith.mulf %53, %54 : vector<2x32x8xf32>
    %56 = arith.addf %50, %55 : vector<2x32x8xf32>
    %57 = vector.extract_strided_slice %0 {offsets = [0, 9, 0], sizes = [2, 1, 8], strides = [1, 1, 1]} : vector<2x16x8xf32> to vector<2x1x8xf32>
    %58 = vector.extract_strided_slice %1 {offsets = [9, 0, 0], sizes = [1, 32, 8], strides = [1, 1, 1]} : vector<16x32x8xf32> to vector<1x32x8xf32>
    %59 = vector.broadcast %57 : vector<2x1x8xf32> to vector<2x32x8xf32>
    %60 = vector.broadcast %58 : vector<1x32x8xf32> to vector<2x32x8xf32>
    %61 = arith.mulf %59, %60 : vector<2x32x8xf32>
    %62 = arith.addf %56, %61 : vector<2x32x8xf32>
    %63 = vector.extract_strided_slice %0 {offsets = [0, 10, 0], sizes = [2, 1, 8], strides = [1, 1, 1]} : vector<2x16x8xf32> to vector<2x1x8xf32>
    %64 = vector.extract_strided_slice %1 {offsets = [10, 0, 0], sizes = [1, 32, 8], strides = [1, 1, 1]} : vector<16x32x8xf32> to vector<1x32x8xf32>
    %65 = vector.broadcast %63 : vector<2x1x8xf32> to vector<2x32x8xf32>
    %66 = vector.broadcast %64 : vector<1x32x8xf32> to vector<2x32x8xf32>
    %67 = arith.mulf %65, %66 : vector<2x32x8xf32>
    %68 = arith.addf %62, %67 : vector<2x32x8xf32>
    %69 = vector.extract_strided_slice %0 {offsets = [0, 11, 0], sizes = [2, 1, 8], strides = [1, 1, 1]} : vector<2x16x8xf32> to vector<2x1x8xf32>
    %70 = vector.extract_strided_slice %1 {offsets = [11, 0, 0], sizes = [1, 32, 8], strides = [1, 1, 1]} : vector<16x32x8xf32> to vector<1x32x8xf32>
    %71 = vector.broadcast %69 : vector<2x1x8xf32> to vector<2x32x8xf32>
    %72 = vector.broadcast %70 : vector<1x32x8xf32> to vector<2x32x8xf32>
    %73 = arith.mulf %71, %72 : vector<2x32x8xf32>
    %74 = arith.addf %68, %73 : vector<2x32x8xf32>
    %75 = vector.extract_strided_slice %0 {offsets = [0, 12, 0], sizes = [2, 1, 8], strides = [1, 1, 1]} : vector<2x16x8xf32> to vector<2x1x8xf32>
    %76 = vector.extract_strided_slice %1 {offsets = [12, 0, 0], sizes = [1, 32, 8], strides = [1, 1, 1]} : vector<16x32x8xf32> to vector<1x32x8xf32>
    %77 = vector.broadcast %75 : vector<2x1x8xf32> to vector<2x32x8xf32>
    %78 = vector.broadcast %76 : vector<1x32x8xf32> to vector<2x32x8xf32>
    %79 = arith.mulf %77, %78 : vector<2x32x8xf32>
    %80 = arith.addf %74, %79 : vector<2x32x8xf32>
    %81 = vector.extract_strided_slice %0 {offsets = [0, 13, 0], sizes = [2, 1, 8], strides = [1, 1, 1]} : vector<2x16x8xf32> to vector<2x1x8xf32>
    %82 = vector.extract_strided_slice %1 {offsets = [13, 0, 0], sizes = [1, 32, 8], strides = [1, 1, 1]} : vector<16x32x8xf32> to vector<1x32x8xf32>
    %83 = vector.broadcast %81 : vector<2x1x8xf32> to vector<2x32x8xf32>
    %84 = vector.broadcast %82 : vector<1x32x8xf32> to vector<2x32x8xf32>
    %85 = arith.mulf %83, %84 : vector<2x32x8xf32>
    %86 = arith.addf %80, %85 : vector<2x32x8xf32>
    %87 = vector.extract_strided_slice %0 {offsets = [0, 14, 0], sizes = [2, 1, 8], strides = [1, 1, 1]} : vector<2x16x8xf32> to vector<2x1x8xf32>
    %88 = vector.extract_strided_slice %1 {offsets = [14, 0, 0], sizes = [1, 32, 8], strides = [1, 1, 1]} : vector<16x32x8xf32> to vector<1x32x8xf32>
    %89 = vector.broadcast %87 : vector<2x1x8xf32> to vector<2x32x8xf32>
    %90 = vector.broadcast %88 : vector<1x32x8xf32> to vector<2x32x8xf32>
    %91 = arith.mulf %89, %90 : vector<2x32x8xf32>
    %92 = arith.addf %86, %91 : vector<2x32x8xf32>
    %93 = vector.extract_strided_slice %0 {offsets = [0, 15, 0], sizes = [2, 1, 8], strides = [1, 1, 1]} : vector<2x16x8xf32> to vector<2x1x8xf32>
    %94 = vector.extract_strided_slice %1 {offsets = [15, 0, 0], sizes = [1, 32, 8], strides = [1, 1, 1]} : vector<16x32x8xf32> to vector<1x32x8xf32>
    %95 = vector.broadcast %93 : vector<2x1x8xf32> to vector<2x32x8xf32>
    %96 = vector.broadcast %94 : vector<1x32x8xf32> to vector<2x32x8xf32>
    %97 = arith.mulf %95, %96 : vector<2x32x8xf32>
    %98 = arith.addf %92, %97 : vector<2x32x8xf32>
    %c0_5 = arith.constant 0 : index
    %c0_6 = arith.constant 0 : index
    %c0_7 = arith.constant 0 : index
    %99 = vector.load %arg3[%c0_5, %c0_6, %c0_7] : memref<1x32x8xf32, #tpu.memory_space<vmem>>, vector<1x32x8xf32>
    %100 = vector.broadcast %99 : vector<1x32x8xf32> to vector<2x32x8xf32>
    %101 = arith.addf %98, %100 : vector<2x32x8xf32>
    %cst_8 = arith.constant 0.000000e+00 : f32
    %102 = vector.broadcast %cst_8 : f32 to vector<2x32x8xf32>
    %103 = arith.maximumf %101, %102 : vector<2x32x8xf32>
    %c0_9 = arith.constant 0 : index
    %c0_10 = arith.constant 0 : index
    %c0_11 = arith.constant 0 : index
    %104 = vector.load %arg4[%c0_9, %c0_10, %c0_11] : memref<32x1x8xf32, #tpu.memory_space<vmem>>, vector<32x1x8xf32>
    %105 = vector.shape_cast %104 : vector<32x1x8xf32> to vector<32x8xf32>
    %106 = vector.shape_cast %105 : vector<32x8xf32> to vector<1x32x8xf32>
    %107 = vector.broadcast %106 : vector<1x32x8xf32> to vector<2x32x8xf32>
    %108 = arith.mulf %103, %107 : vector<2x32x8xf32>
    %cst_12 = arith.constant dense<0.000000e+00> : vector<2x8xf32>
    %109 = vector.multi_reduction <add>, %108, %cst_12 [1] : vector<2x32x8xf32> to vector<2x8xf32>
    %110 = vector.shape_cast %109 : vector<2x8xf32> to vector<2x1x8xf32>
    %c0_13 = arith.constant 0 : index
    %c0_14 = arith.constant 0 : index
    %c0_15 = arith.constant 0 : index
    %111 = vector.load %arg5[%c0_13, %c0_14, %c0_15] : memref<1x1x8xf32, #tpu.memory_space<vmem>>, vector<1x1x8xf32>
    %112 = vector.broadcast %111 : vector<1x1x8xf32> to vector<2x1x8xf32>
    %113 = arith.addf %110, %112 : vector<2x1x8xf32>
    %c0_16 = arith.constant 0 : index
    %c0_17 = arith.constant 0 : index
    %c0_18 = arith.constant 0 : index
    %114 = vector.load %arg6[%c0_16, %c0_17, %c0_18] : memref<2x1x8xf32, #tpu.memory_space<vmem>>, vector<2x1x8xf32>
    tpu.vector_store %arg6[%c0_16, %c0_17, %c0_18], %113 {strides = array<i32>} : memref<2x1x8xf32, #tpu.memory_space<vmem>>, vector<2x1x8xf32>,
    return
  }
  func.func @transform_0(%arg0: i32) -> (i32, i32, i32) {
    %c0_i32 = arith.constant 0 : i32
    %c0_i32_0 = arith.constant 0 : i32
    %c0_i32_1 = arith.constant 0 : i32
    return %c0_i32, %c0_i32_0, %arg0 : i32, i32, i32
  }
  func.func @transform_1(%arg0: i32) -> (i32, i32, i32) {
    %c0_i32 = arith.constant 0 : i32
    %c0_i32_0 = arith.constant 0 : i32
    %c0_i32_1 = arith.constant 0 : i32
    return %c0_i32, %c0_i32_0, %arg0 : i32, i32, i32
  }
  func.func @transform_2(%arg0: i32) -> (i32, i32, i32) {
    %c0_i32 = arith.constant 0 : i32
    %c0_i32_0 = arith.constant 0 : i32
    %c0_i32_1 = arith.constant 0 : i32
    return %c0_i32, %c0_i32_0, %arg0 : i32, i32, i32
  }
  func.func @transform_3(%arg0: i32) -> (i32, i32, i32) {
    %c0_i32 = arith.constant 0 : i32
    %c0_i32_0 = arith.constant 0 : i32
    %c0_i32_1 = arith.constant 0 : i32
    return %c0_i32, %c0_i32_0, %arg0 : i32, i32, i32
  }
  func.func @transform_4(%arg0: i32) -> (i32, i32, i32) {
    %c0_i32 = arith.constant 0 : i32
    %c0_i32_0 = arith.constant 0 : i32
    %c0_i32_1 = arith.constant 0 : i32
    return %c0_i32, %c0_i32_0, %arg0 : i32, i32, i32
  }
  func.func @transform_5(%arg0: i32) -> (i32, i32, i32) {
    %c0_i32 = arith.constant 0 : i32
    %c0_i32_0 = arith.constant 0 : i32
    %c0_i32_1 = arith.constant 0 : i32
    return %c0_i32, %c0_i32_0, %arg0 : i32, i32, i32
  }
}

</mosaic_0001>

<bundles_post_ra>
// kernel: gene_regressor_list.1
= control target key start
LH: loop header
LB: loop body
LE: loop exit
PB: predicated region body
PF: predicated region fallthrough
CT: control target
= control target key end

     0   :  { %10 = vsyncpa [#allocation3], 0  ;;  %v89_v0 = vlaneseq  ;;  %v842_v1 = vmov 1966171168   ;;  %vm765_vm0 = vcmask 64512   ;;  %vm795_vm1 = vcmask 57344   ;;  %s1408_s0 = inlined_call_operand.vmem [shape: f32[2,16,8], index: 0, kind: input, shape index: {}]   ;;  %s1409_s1 = inlined_call_operand.vmem [shape: f32[16,32,8], index: 1, kind: input, shape index: {}]   ;;  %s1410_s2 = inlined_call_operand.vmem [shape: f32[1,32,8], index: 2, kind: input, shape index: {}]   ;;  %s1411_s3 = inlined_call_operand.vmem [shape: f32[32,1,8], index: 3, kind: input, shape index: {}]   ;;  %s1412_s4 = inlined_call_operand.vmem [shape: f32[1,1,8], index: 4, kind: input, shape index: {}]   ;;  %s1413_s5 = inlined_call_operand.hbm [shape: f32[2,1,8], index: 5, kind: output, shape index: {}]  }
   0x1   :  { %v876_v2 = vunpack.c.l.s4 %v842_v1  ;;  %v883_v4 = vld [vmem:[%s1408_s0] sm:$0xff]  ;;  %v888_v5 = vld [vmem:[%s1408_s0 + $0x10] sm:$0xff]  ;;  %v26_v10 = vld [vmem:[%s1409_s1 + $0x8] sm:$0xff] }
   0x2   :  { %v878_v3 = vshrl.u32 %v89_v0, 7  ;;  %v25_v6 = vld [vmem:[%s1409_s1] sm:$0xff]  ;;  %v27_v11 = vld [vmem:[%s1409_s1 + $0x10] sm:$0xff]  ;;  %v28_v12 = vld [vmem:[%s1409_s1 + $0x18] sm:$0xff] }
   0x3   :  { %v563_v16 = vunpack.c.0.s8 %v876_v2  ;;  %v29_v17 = vld [vmem:[%s1409_s1 + $0x20] sm:$0xff]  ;;  %v30_v22 = vld [vmem:[%s1409_s1 + $0x28] sm:$0xff]  ;;  %v31_v23 = vld [vmem:[%s1409_s1 + $0x30] sm:$0xff] }
   0x4   :  { %v894_v7 = vsub.s32 0, %v878_v3  ;;  %v897_v8 = vsub.s32 1, %v878_v3  ;;  %v900_v9 = vsub.s32 2, %v878_v3  ;;  %v912_v13 = vsub.s32 3, %v878_v3  ;;  %v32_v24 = vld [vmem:[%s1409_s1 + $0x38] sm:$0xff]  ;;  %v33_v37 = vld [vmem:[%s1409_s1 + $0x40] sm:$0xff] }
   0x5   :  { %v915_v14 = vsub.s32 4, %v878_v3  ;;  %v918_v15 = vsub.s32 5, %v878_v3  ;;  %v34_v42 = vld [vmem:[%s1409_s1 + $0x48] sm:$0xff]  ;;  %v35_v43 = vld [vmem:[%s1409_s1 + $0x50] sm:$0xff]  ;;  %v36_v44 = vld [vmem:[%s1409_s1 + $0x58] sm:$0xff] }
   0x6   :  { %v92_v18 = vrot.slane %v883_v4, %v894_v7  ;;  %v96_v19 = vrot.slane %v888_v5, %v894_v7  ;;  %v116_v20 = vrot.slane %v883_v4, %v897_v8  ;;  %v120_v21 = vrot.slane %v888_v5, %v897_v8  ;;  %v37_v57 = vld [vmem:[%s1409_s1 + $0x60] sm:$0xff]  ;;  %v38_v62 = vld [vmem:[%s1409_s1 + $0x68] sm:$0xff]  ;;  %v39_v63 = vld [vmem:[%s1409_s1 + $0x70] sm:$0xff] }
   0x7   :  { %v140_v25 = vrot.slane %v883_v4, %v900_v9  ;;  %v144_v26 = vrot.slane %v888_v5, %v900_v9  ;;  %v164_v27 = vrot.slane %v883_v4, %v912_v13  ;;  %v168_v28 = vrot.slane %v888_v5, %v912_v13  ;;  %v40_v0 = vld [vmem:[%s1409_s1 + $0x78] sm:$0xff] }
   0x8   :  { %v97_v29 = vmul.f32 %v92_v18, %v25_v6  ;;  %v98_v30 = vmul.f32 %v92_v18, %v26_v10  ;;  %v99_v31 = vmul.f32 %v92_v18, %v27_v11  ;;  %v100_v32 = vmul.f32 %v92_v18, %v28_v12 }
   0x9   :  { %v101_v33 = vmul.f32 %v96_v19, %v25_v6  ;;  %v102_v34 = vmul.f32 %v96_v19, %v26_v10  ;;  %v103_v35 = vmul.f32 %v96_v19, %v27_v11  ;;  %v104_v36 = vmul.f32 %v96_v19, %v28_v12 }
   0xa   :  { %v121_v38 = vmul.f32 %v116_v20, %v29_v17  ;;  %v122_v39 = vmul.f32 %v116_v20, %v30_v22  ;;  %v123_v40 = vmul.f32 %v116_v20, %v31_v23  ;;  %v124_v41 = vmul.f32 %v116_v20, %v32_v24 }
   0xb   :  { %v125_v45 = vmul.f32 %v120_v21, %v29_v17  ;;  %v126_v46 = vmul.f32 %v120_v21, %v30_v22  ;;  %v127_v47 = vmul.f32 %v120_v21, %v31_v23  ;;  %v128_v48 = vmul.f32 %v120_v21, %v32_v24 }
   0xc   :  { %v129_v49 = vadd.f32 %v121_v38, %v97_v29  ;;  %v130_v50 = vadd.f32 %v122_v39, %v98_v30  ;;  %v131_v51 = vadd.f32 %v123_v40, %v99_v31  ;;  %v132_v52 = vadd.f32 %v124_v41, %v100_v32  ;;  %v43_v40 = vld [vmem:[%s1409_s1 + $0x90] sm:$0xff]  ;;  %v44_v41 = vld [vmem:[%s1409_s1 + $0x98] sm:$0xff] }
   0xd   :  { %v133_v53 = vadd.f32 %v125_v45, %v101_v33  ;;  %v134_v54 = vadd.f32 %v126_v46, %v102_v34  ;;  %v135_v55 = vadd.f32 %v127_v47, %v103_v35  ;;  %v136_v56 = vadd.f32 %v128_v48, %v104_v36  ;;  %v981_v35 = vld [vmem:[%s1408_s0 + $0x18] sm:$0xff]  ;;  %v41_v36 = vld [vmem:[%s1409_s1 + $0x80] sm:$0xff] }
   0xe   :  { %v145_v58 = vmul.f32 %v140_v25, %v33_v37  ;;  %v146_v59 = vmul.f32 %v140_v25, %v34_v42  ;;  %v147_v60 = vmul.f32 %v140_v25, %v35_v43  ;;  %v148_v61 = vmul.f32 %v140_v25, %v36_v44 }
   0xf   :  { %v149_v1 = vmul.f32 %v144_v26, %v33_v37  ;;  %v150_v6 = vmul.f32 %v144_v26, %v34_v42  ;;  %v151_v10 = vmul.f32 %v144_v26, %v35_v43  ;;  %v152_v11 = vmul.f32 %v144_v26, %v36_v44  ;;  %v976_v26 = vld [vmem:[%s1408_s0 + $0x8] sm:$0xff]  ;;  %s843_s0 = smov [#allocation2]  }
  0x10   :  { %v153_v12 = vadd.f32 %v145_v58, %v129_v49  ;;  %v154_v17 = vadd.f32 %v146_v59, %v130_v50  ;;  %v155_v18 = vadd.f32 %v147_v60, %v131_v51  ;;  %v156_v19 = vadd.f32 %v148_v61, %v132_v52  ;;  %v46_v59 = vld [vmem:[%s1409_s1 + $0xa8] sm:$0xff]  ;;  %v47_v60 = vld [vmem:[%s1409_s1 + $0xb0] sm:$0xff]  ;;  %s803_s16 = sshll.u32 %s843_s0, 4  ;;  %s804_s16 = int_to_ptr.vmem [resolvable:$true] %s803_s16 }
  0x11   :  { %v157_v20 = vadd.f32 %v149_v1, %v133_v53  ;;  %v158_v21 = vadd.f32 %v150_v6, %v134_v54  ;;  %v159_v22 = vadd.f32 %v151_v10, %v135_v55  ;;  %v160_v23 = vadd.f32 %v152_v11, %v136_v56  ;;  %v45_v54 = vld [vmem:[%s1409_s1 + $0xa0] sm:$0xff]  ;;  %s818_s17 = scalar_lea.vmem %s804_s16, 32  ;;  %p823_p1 = scmp.lt.s32.totalorder %s804_s16, %s804_s16 }
  0x12   :  { %v169_v24 = vmul.f32 %v164_v27, %v37_v57  ;;  %v170_v25 = vmul.f32 %v164_v27, %v38_v62  ;;  %v171_v29 = vmul.f32 %v164_v27, %v39_v63  ;;  %v172_v30 = vmul.f32 %v164_v27, %v40_v0  ;;  %p819_p0 = scmp.ne.s32.totalorder %s804_s16, %s818_s17  ;;  %p824_p2 = scmp.lt.s32.totalorder %s818_s17, %s818_s17 }
  0x13   :  { %v173_v31 = vmul.f32 %v168_v28, %v37_v57  ;;  %v174_v32 = vmul.f32 %v168_v28, %v38_v62  ;;  %v175_v33 = vmul.f32 %v168_v28, %v39_v63  ;;  %v176_v34 = vmul.f32 %v168_v28, %v40_v0  ;;  %v42_v28 = vld [vmem:[%s1409_s1 + $0x88] sm:$0xff] }
  0x14   :  { %v177_v37 = vadd.f32 %v169_v24, %v153_v12  ;;  %v178_v27 = vadd.f32 %v170_v25, %v154_v17  ;;  %v179_v38 = vadd.f32 %v171_v29, %v155_v18  ;;  %v180_v39 = vadd.f32 %v172_v30, %v156_v19  ;;  %v49_v24 = vld [vmem:[%s1409_s1 + $0xc0] sm:$0xff]  ;;  %p825_p3 = por %p824_p2, %p823_p1 }
  0x15   :  { %v181_v42 = vadd.f32 %v173_v31, %v157_v20  ;;  %v182_v43 = vadd.f32 %v174_v32, %v158_v21  ;;  %v183_v44 = vadd.f32 %v175_v33, %v159_v22  ;;  %v184_v45 = vadd.f32 %v176_v34, %v160_v23  ;;  %v1033_v25 = vld [vmem:[%s1409_s1 + $0x100] sm:$0xff]  ;;  %v58_v33 = vld [vmem:[%s1409_s1 + $0x108] sm:$0xff]  ;;  %v59_v34 = vld [vmem:[%s1409_s1 + $0x110] sm:$0xff] }
  0x16   :  { %v188_v46 = vrot.slane %v883_v4, %v915_v14  ;;  %v192_v47 = vrot.slane %v888_v5, %v915_v14  ;;  %v212_v48 = vrot.slane %v883_v4, %v918_v15  ;;  %v216_v49 = vrot.slane %v888_v5, %v918_v15  ;;  %p826_p4 = pnand %p825_p3, %p819_p0 }
  0x17   :  { %v1004_v50 = vsub.s32 6, %v878_v3  ;;  %v1007_v51 = vsub.s32 7, %v878_v3  ;;  %v284_v52 = vrot.slane %v976_v26, %v894_v7  ;;  %v1013_v53 = vrot.slane %v981_v35, %v894_v7  ;;  %v48_v7 = vld [vmem:[%s1409_s1 + $0xb8] sm:$0xff] }
  0x18   :  { %v193_v55 = vmul.f32 %v188_v46, %v41_v36  ;;  %v194_v56 = vmul.f32 %v188_v46, %v42_v28  ;;  %v195_v57 = vmul.f32 %v188_v46, %v43_v40  ;;  %v196_v58 = vmul.f32 %v188_v46, %v44_v41 }
  0x19   :  { %v197_v61 = vmul.f32 %v192_v47, %v41_v36  ;;  %v198_v62 = vmul.f32 %v192_v47, %v42_v28  ;;  %v199_v63 = vmul.f32 %v192_v47, %v43_v40  ;;  %v200_v0 = vmul.f32 %v192_v47, %v44_v41  ;;  %v60_v36 = vld [vmem:[%s1409_s1 + $0x118] sm:$0xff]  ;;  %v50_v28 = vld [vmem:[%s1409_s1 + $0xc8] sm:$0xff]  ;;  %v51_v40 = vld [vmem:[%s1409_s1 + $0xd0] sm:$0xff] }
  0x1a   :  { %v201_v1 = vadd.f32 %v193_v55, %v177_v37  ;;  %v202_v6 = vadd.f32 %v194_v56, %v178_v27  ;;  %v203_v10 = vadd.f32 %v195_v57, %v179_v38  ;;  %v204_v11 = vadd.f32 %v196_v58, %v180_v39  ;;  %v52_v41 = vld [vmem:[%s1409_s1 + $0xd8] sm:$0xff]  ;;  %v53_v58 = vld [vmem:[%s1409_s1 + $0xe0] sm:$0xff] }
  0x1b   :  { %v205_v12 = vadd.f32 %v197_v61, %v181_v42  ;;  %v206_v17 = vadd.f32 %v198_v62, %v182_v43  ;;  %v207_v18 = vadd.f32 %v199_v63, %v183_v44  ;;  %v208_v19 = vadd.f32 %v200_v0, %v184_v45 }
  0x1c   :  { %v217_v20 = vmul.f32 %v212_v48, %v45_v54  ;;  %v218_v21 = vmul.f32 %v212_v48, %v46_v59  ;;  %v219_v22 = vmul.f32 %v212_v48, %v47_v60  ;;  %v220_v23 = vmul.f32 %v212_v48, %v48_v7 }
  0x1d   :  { %v221_v29 = vmul.f32 %v216_v49, %v45_v54  ;;  %v222_v30 = vmul.f32 %v216_v49, %v46_v59  ;;  %v223_v31 = vmul.f32 %v216_v49, %v47_v60  ;;  %v224_v32 = vmul.f32 %v216_v49, %v48_v7 }
  0x1e   :  { %v225_v37 = vadd.f32 %v217_v20, %v201_v1  ;;  %v226_v27 = vadd.f32 %v218_v21, %v202_v6  ;;  %v227_v38 = vadd.f32 %v219_v22, %v203_v10  ;;  %v228_v39 = vadd.f32 %v220_v23, %v204_v11 }
  0x1f   :  { %v229_v42 = vadd.f32 %v221_v29, %v205_v12  ;;  %v230_v43 = vadd.f32 %v222_v30, %v206_v17  ;;  %v231_v44 = vadd.f32 %v223_v31, %v207_v18  ;;  %v232_v45 = vadd.f32 %v224_v32, %v208_v19 }
  0x20   :  { %v236_v46 = vrot.slane %v883_v4, %v1004_v50  ;;  %v240_v47 = vrot.slane %v888_v5, %v1004_v50  ;;  %v260_v48 = vrot.slane %v883_v4, %v1007_v51  ;;  %v264_v49 = vrot.slane %v888_v5, %v1007_v51  ;;  %v54_v4 = vld [vmem:[%s1409_s1 + $0xe8] sm:$0xff]  ;;  %v55_v5 = vld [vmem:[%s1409_s1 + $0xf0] sm:$0xff] }
  0x21   :  { %v289_v54 = vmul.f32 %v284_v52, %v1033_v25  ;;  %v290_v55 = vmul.f32 %v284_v52, %v58_v33  ;;  %v291_v56 = vmul.f32 %v284_v52, %v59_v34  ;;  %v292_v57 = vmul.f32 %v284_v52, %v60_v36  ;;  %v56_v52 = vld [vmem:[%s1409_s1 + $0xf8] sm:$0xff] }
  0x22   :  { %v241_v59 = vmul.f32 %v236_v46, %v49_v24  ;;  %v242_v60 = vmul.f32 %v236_v46, %v50_v28  ;;  %v243_v7 = vmul.f32 %v236_v46, %v51_v40  ;;  %v244_v61 = vmul.f32 %v236_v46, %v52_v41 }
  0x23   :  { %v245_v62 = vmul.f32 %v240_v47, %v49_v24  ;;  %v246_v63 = vmul.f32 %v240_v47, %v50_v28  ;;  %v247_v0 = vmul.f32 %v240_v47, %v51_v40  ;;  %v248_v1 = vmul.f32 %v240_v47, %v52_v41  ;;  %v61_v47 = vld [vmem:[%s1409_s1 + $0x120] sm:$0xff] }
  0x24   :  { %v249_v6 = vadd.f32 %v241_v59, %v225_v37  ;;  %v250_v10 = vadd.f32 %v242_v60, %v226_v27  ;;  %v251_v11 = vadd.f32 %v243_v7, %v227_v38  ;;  %v252_v12 = vadd.f32 %v244_v61, %v228_v39  ;;  %v62_v60 = vld [vmem:[%s1409_s1 + $0x128] sm:$0xff] }
  0x25   :  { %v253_v17 = vadd.f32 %v245_v62, %v229_v42  ;;  %v254_v18 = vadd.f32 %v246_v63, %v230_v43  ;;  %v255_v19 = vadd.f32 %v247_v0, %v231_v44  ;;  %v256_v20 = vadd.f32 %v248_v1, %v232_v45  ;;  %v67_v1 = vld [vmem:[%s1409_s1 + $0x150] sm:$0xff] }
  0x26   :  { %v265_v21 = vmul.f32 %v260_v48, %v53_v58  ;;  %v266_v22 = vmul.f32 %v260_v48, %v54_v4  ;;  %v267_v23 = vmul.f32 %v260_v48, %v55_v5  ;;  %v268_v29 = vmul.f32 %v260_v48, %v56_v52 }
  0x27   :  { %v269_v30 = vmul.f32 %v264_v49, %v53_v58  ;;  %v270_v31 = vmul.f32 %v264_v49, %v54_v4  ;;  %v271_v32 = vmul.f32 %v264_v49, %v55_v5  ;;  %v272_v46 = vmul.f32 %v264_v49, %v56_v52 }
  0x28   :  { %v273_v24 = vadd.f32 %v265_v21, %v249_v6  ;;  %v274_v28 = vadd.f32 %v266_v22, %v250_v10  ;;  %v275_v40 = vadd.f32 %v267_v23, %v251_v11  ;;  %v276_v41 = vadd.f32 %v268_v29, %v252_v12 }
  0x29   :  { %v277_v37 = vadd.f32 %v269_v30, %v253_v17  ;;  %v278_v27 = vadd.f32 %v270_v31, %v254_v18  ;;  %v279_v38 = vadd.f32 %v271_v32, %v255_v19  ;;  %v280_v39 = vadd.f32 %v272_v46, %v256_v20  ;;  %v69_v30 = vld [vmem:[%s1409_s1 + $0x160] sm:$0xff] }
  0x2a   :  { %v293_v42 = vmul.f32 %v1013_v53, %v1033_v25  ;;  %v294_v43 = vmul.f32 %v1013_v53, %v58_v33  ;;  %v295_v44 = vmul.f32 %v1013_v53, %v59_v34  ;;  %v296_v45 = vmul.f32 %v1013_v53, %v60_v36  ;;  %v63_v25 = vld [vmem:[%s1409_s1 + $0x130] sm:$0xff]  ;;  %v64_v53 = vld [vmem:[%s1409_s1 + $0x138] sm:$0xff] }
  0x2b   :  { %v297_v48 = vadd.f32 %v289_v54, %v273_v24  ;;  %v298_v49 = vadd.f32 %v290_v55, %v274_v28  ;;  %v299_v58 = vadd.f32 %v291_v56, %v275_v40  ;;  %v300_v59 = vadd.f32 %v292_v57, %v276_v41  ;;  %v70_v28 = vld [vmem:[%s1409_s1 + $0x168] sm:$0xff]  ;;  %v71_v40 = vld [vmem:[%s1409_s1 + $0x170] sm:$0xff]  ;;  %v72_v41 = vld [vmem:[%s1409_s1 + $0x178] sm:$0xff] }
  0x2c   :  { %v301_v33 = vadd.f32 %v293_v42, %v277_v37  ;;  %v302_v34 = vadd.f32 %v294_v43, %v278_v27  ;;  %v303_v36 = vadd.f32 %v295_v44, %v279_v38  ;;  %v304_v7 = vadd.f32 %v296_v45, %v280_v39 }
  0x2d   :  { %v308_v54 = vrot.slane %v976_v26, %v897_v8  ;;  %v312_v55 = vrot.slane %v981_v35, %v897_v8  ;;  %v332_v56 = vrot.slane %v976_v26, %v900_v9  ;;  %v336_v57 = vrot.slane %v981_v35, %v900_v9  ;;  %v65_v8 = vld [vmem:[%s1409_s1 + $0x140] sm:$0xff] }
  0x2e   :  { %v356_v61 = vrot.slane %v976_v26, %v912_v13  ;;  %v360_v4 = vrot.slane %v981_v35, %v912_v13  ;;  %v1105_v5 = vrot.slane %v976_v26, %v915_v14  ;;  %v1109_v52 = vrot.slane %v981_v35, %v915_v14  ;;  %v66_v13 = vld [vmem:[%s1409_s1 + $0x148] sm:$0xff]  ;;  %v68_v14 = vld [vmem:[%s1409_s1 + $0x158] sm:$0xff] }
  0x2f   :  { %v313_v62 = vmul.f32 %v308_v54, %v61_v47  ;;  %v314_v9 = vmul.f32 %v308_v54, %v62_v60  ;;  %v315_v63 = vmul.f32 %v308_v54, %v63_v25  ;;  %v316_v0 = vmul.f32 %v308_v54, %v64_v53 }
  0x30   :  { %v317_v6 = vmul.f32 %v312_v55, %v61_v47  ;;  %v318_v10 = vmul.f32 %v312_v55, %v62_v60  ;;  %v319_v11 = vmul.f32 %v312_v55, %v63_v25  ;;  %v320_v12 = vmul.f32 %v312_v55, %v64_v53 }
  0x31   :  { %v321_v17 = vadd.f32 %v313_v62, %v297_v48  ;;  %v322_v18 = vadd.f32 %v314_v9, %v298_v49  ;;  %v323_v19 = vadd.f32 %v315_v63, %v299_v58  ;;  %v324_v20 = vadd.f32 %v316_v0, %v300_v59  ;;  %v73_v59 = vld [vmem:[%s1409_s1 + $0x180] sm:$0xff] }
  0x32   :  { %v325_v21 = vadd.f32 %v317_v6, %v301_v33  ;;  %v326_v22 = vadd.f32 %v318_v10, %v302_v34  ;;  %v327_v23 = vadd.f32 %v319_v11, %v303_v36  ;;  %v328_v29 = vadd.f32 %v320_v12, %v304_v7  ;;  %v74_v34 = vld [vmem:[%s1409_s1 + $0x188] sm:$0xff]  ;;  %v75_v36 = vld [vmem:[%s1409_s1 + $0x190] sm:$0xff]  ;;  %v76_v7 = vld [vmem:[%s1409_s1 + $0x198] sm:$0xff] }
  0x33   :  { %v337_v31 = vmul.f32 %v332_v56, %v65_v8  ;;  %v338_v32 = vmul.f32 %v332_v56, %v66_v13  ;;  %v339_v46 = vmul.f32 %v332_v56, %v67_v1  ;;  %v340_v24 = vmul.f32 %v332_v56, %v68_v14 }
  0x34   :  { %v341_v37 = vmul.f32 %v336_v57, %v65_v8  ;;  %v342_v27 = vmul.f32 %v336_v57, %v66_v13  ;;  %v343_v38 = vmul.f32 %v336_v57, %v67_v1  ;;  %v344_v39 = vmul.f32 %v336_v57, %v68_v14 }
  0x35   :  { %v345_v42 = vadd.f32 %v337_v31, %v321_v17  ;;  %v346_v43 = vadd.f32 %v338_v32, %v322_v18  ;;  %v347_v44 = vadd.f32 %v339_v46, %v323_v19  ;;  %v348_v45 = vadd.f32 %v340_v24, %v324_v20  ;;  %v77_v19 = vld [vmem:[%s1409_s1 + $0x1a0] sm:$0xff]  ;;  %v80_v31 = vld [vmem:[%s1409_s1 + $0x1b8] sm:$0xff] }
  0x36   :  { %v349_v47 = vadd.f32 %v341_v37, %v325_v21  ;;  %v350_v48 = vadd.f32 %v342_v27, %v326_v22  ;;  %v351_v49 = vadd.f32 %v343_v38, %v327_v23  ;;  %v352_v58 = vadd.f32 %v344_v39, %v328_v29  ;;  %v1161_v23 = vld [vmem:[%s1411_s3] sm:$0x1]  ;;  %v78_v29 = vld [vmem:[%s1409_s1 + $0x1a8] sm:$0xff] }
  0x37   :  { %v361_v60 = vmul.f32 %v356_v61, %v69_v30  ;;  %v362_v25 = vmul.f32 %v356_v61, %v70_v28  ;;  %v363_v53 = vmul.f32 %v356_v61, %v71_v40  ;;  %v364_v33 = vmul.f32 %v356_v61, %v72_v41  ;;  %v81_v39 = vld [vmem:[%s1409_s1 + $0x1c0] sm:$0xff] }
  0x38   :  { %v365_v54 = vmul.f32 %v360_v4, %v69_v30  ;;  %v366_v55 = vmul.f32 %v360_v4, %v70_v28  ;;  %v367_v56 = vmul.f32 %v360_v4, %v71_v40  ;;  %v368_v57 = vmul.f32 %v360_v4, %v72_v41  ;;  %v79_v30 = vld [vmem:[%s1409_s1 + $0x1b0] sm:$0xff] }
  0x39   :  { %v369_v8 = vadd.f32 %v361_v60, %v345_v42  ;;  %v370_v62 = vadd.f32 %v362_v25, %v346_v43  ;;  %v371_v9 = vadd.f32 %v363_v53, %v347_v44  ;;  %v372_v61 = vadd.f32 %v364_v33, %v348_v45 }
  0x3a   :  { %v373_v63 = vadd.f32 %v365_v54, %v349_v47  ;;  %v374_v0 = vadd.f32 %v366_v55, %v350_v48  ;;  %v375_v13 = vadd.f32 %v367_v56, %v351_v49  ;;  %v376_v1 = vadd.f32 %v368_v57, %v352_v58  ;;  %v86_v57 = vld [vmem:[%s1409_s1 + $0x1e8] sm:$0xff] }
  0x3b   :  { %v385_v14 = vmul.f32 %v1105_v5, %v73_v59  ;;  %v386_v6 = vmul.f32 %v1105_v5, %v74_v34  ;;  %v387_v10 = vmul.f32 %v1105_v5, %v75_v36  ;;  %v388_v11 = vmul.f32 %v1105_v5, %v76_v7  ;;  %v1166_v5 = vld [vmem:[%s1411_s3 + $0x1] sm:$0x1] }
  0x3c   :  { %v389_v12 = vmul.f32 %v1109_v52, %v73_v59  ;;  %v390_v4 = vmul.f32 %v1109_v52, %v74_v34  ;;  %v391_v17 = vmul.f32 %v1109_v52, %v75_v36  ;;  %v392_v18 = vmul.f32 %v1109_v52, %v76_v7  ;;  %v85_v36 = vld [vmem:[%s1409_s1 + $0x1e0] sm:$0xff] }
  0x3d   :  { %v393_v20 = vadd.f32 %v385_v14, %v369_v8  ;;  %v394_v21 = vadd.f32 %v386_v6, %v370_v62  ;;  %v395_v22 = vadd.f32 %v387_v10, %v371_v9  ;;  %v1171_v52 = vsub.s32 %v563_v16, %v878_v3  ;;  %v87_v8 = vld [vmem:[%s1409_s1 + $0x1f0] sm:$0xff]  ;;  %v88_v62 = vld [vmem:[%s1409_s1 + $0x1f8] sm:$0xff] }
  0x3e   :  { %v396_v32 = vadd.f32 %v388_v11, %v372_v61  ;;  %v397_v46 = vadd.f32 %v389_v12, %v373_v63  ;;  %v398_v24 = vadd.f32 %v390_v4, %v374_v0  ;;  %v399_v28 = vadd.f32 %v391_v17, %v375_v13 }
  0x3f   :  { %v400_v40 = vadd.f32 %v392_v18, %v376_v1  ;;  %v404_v2 = vrot.slane %v976_v26, %v918_v15  ;;  %v408_v3 = vrot.slane %v981_v35, %v918_v15  ;;  %v428_v16 = vrot.slane %v976_v26, %v1004_v50 }
  0x40   :  { %v432_v41 = vrot.slane %v981_v35, %v1004_v50  ;;  %v452_v37 = vrot.slane %v976_v26, %v1007_v51  ;;  %v456_v27 = vrot.slane %v981_v35, %v1007_v51  ;;  %v557_v38 = vcombine.low %v1161_v23, %v1166_v5  ;;  %v82_v50 = vld [vmem:[%s1409_s1 + $0x1c8] sm:$0xff]  ;;  %v83_v26 = vld [vmem:[%s1409_s1 + $0x1d0] sm:$0xff]  ;;  %v84_v35 = vld [vmem:[%s1409_s1 + $0x1d8] sm:$0xff] }
  0x41   :  { %v409_v15 = vmul.f32 %v404_v2, %v77_v19  ;;  %v410_v42 = vmul.f32 %v404_v2, %v78_v29  ;;  %v411_v43 = vmul.f32 %v404_v2, %v79_v30  ;;  %v412_v44 = vmul.f32 %v404_v2, %v80_v31  ;;  %v515_v23 = vld [vmem:[%s1411_s3 + $0x16] sm:$0x1]  ;;  %v516_v5 = vld [vmem:[%s1411_s3 + $0x17] sm:$0x1] }
  0x42   :  { %v413_v51 = vmul.f32 %v408_v3, %v77_v19  ;;  %v414_v45 = vmul.f32 %v408_v3, %v78_v29  ;;  %v415_v47 = vmul.f32 %v408_v3, %v79_v30  ;;  %v416_v48 = vmul.f32 %v408_v3, %v80_v31 }
  0x43   :  { %v417_v49 = vadd.f32 %v409_v15, %v393_v20  ;;  %v418_v58 = vadd.f32 %v410_v42, %v394_v21  ;;  %v419_v59 = vadd.f32 %v411_v43, %v395_v22  ;;  %v420_v60 = vadd.f32 %v412_v44, %v396_v32  ;;  %v473_v21 = vld [vmem:[%s1410_s2] sm:$0xff]  ;;  %v474_v22 = vld [vmem:[%s1410_s2 + $0x8] sm:$0xff] }
  0x44   :  { %v421_v25 = vadd.f32 %v413_v51, %v397_v46  ;;  %v422_v53 = vadd.f32 %v414_v45, %v398_v24  ;;  %v423_v33 = vadd.f32 %v415_v47, %v399_v28  ;;  %v424_v34 = vadd.f32 %v416_v48, %v400_v40  ;;  %v475_v46 = vld [vmem:[%s1410_s2 + $0x10] sm:$0xff]  ;;  %v495_v24 = vld [vmem:[%s1411_s3 + $0x2] sm:$0x1]  ;;  %v496_v28 = vld [vmem:[%s1411_s3 + $0x3] sm:$0x1] }
  0x45   :  { %v433_v7 = vmul.f32 %v428_v16, %v81_v39  ;;  %v434_v54 = vmul.f32 %v428_v16, %v82_v50  ;;  %v435_v55 = vmul.f32 %v428_v16, %v83_v26  ;;  %v436_v56 = vmul.f32 %v428_v16, %v84_v35  ;;  %v497_v42 = vld [vmem:[%s1411_s3 + $0x4] sm:$0x1]  ;;  %v498_v43 = vld [vmem:[%s1411_s3 + $0x5] sm:$0x1]  ;;  %v499_v44 = vld [vmem:[%s1411_s3 + $0x6] sm:$0x1] }
  0x46   :  { %v437_v9 = vmul.f32 %v432_v41, %v81_v39  ;;  %v438_v61 = vmul.f32 %v432_v41, %v82_v50  ;;  %v439_v63 = vmul.f32 %v432_v41, %v83_v26  ;;  %v440_v0 = vmul.f32 %v432_v41, %v84_v35  ;;  %v476_v41 = vld [vmem:[%s1410_s2 + $0x18] sm:$0xff]  ;;  %v500_v50 = vld [vmem:[%s1411_s3 + $0x7] sm:$0x1]  ;;  %v501_v45 = vld [vmem:[%s1411_s3 + $0x8] sm:$0x1] }
  0x47   :  { %v441_v13 = vadd.f32 %v433_v7, %v417_v49  ;;  %v442_v1 = vadd.f32 %v434_v54, %v418_v58  ;;  %v443_v14 = vadd.f32 %v435_v55, %v419_v59  ;;  %v444_v6 = vadd.f32 %v436_v56, %v420_v60  ;;  %v502_v47 = vld [vmem:[%s1411_s3 + $0x9] sm:$0x1]  ;;  %v503_v48 = vld [vmem:[%s1411_s3 + $0xa] sm:$0x1]  ;;  %v504_v49 = vld [vmem:[%s1411_s3 + $0xb] sm:$0x1] }
  0x48   :  { %v445_v10 = vadd.f32 %v437_v9, %v421_v25  ;;  %v446_v11 = vadd.f32 %v438_v61, %v422_v53  ;;  %v447_v12 = vadd.f32 %v439_v63, %v423_v33  ;;  %v448_v4 = vadd.f32 %v440_v0, %v424_v34  ;;  %v505_v53 = vld [vmem:[%s1411_s3 + $0xc] sm:$0x1]  ;;  %v506_v33 = vld [vmem:[%s1411_s3 + $0xd] sm:$0x1]  ;;  %v507_v34 = vld [vmem:[%s1411_s3 + $0xe] sm:$0x1] }
  0x49   :  { %v457_v17 = vmul.f32 %v452_v37, %v85_v36  ;;  %v458_v18 = vmul.f32 %v452_v37, %v86_v57  ;;  %v459_v19 = vmul.f32 %v452_v37, %v87_v8  ;;  %v460_v20 = vmul.f32 %v452_v37, %v88_v62  ;;  %v508_v56 = vld [vmem:[%s1411_s3 + $0xf] sm:$0x1]  ;;  %v510_v63 = vld [vmem:[%s1411_s3 + $0x11] sm:$0x1]  ;;  %v511_v0 = vld [vmem:[%s1411_s3 + $0x12] sm:$0x1] }
  0x4a   :  { %v461_v29 = vmul.f32 %v456_v27, %v85_v36  ;;  %v462_v30 = vmul.f32 %v456_v27, %v86_v57  ;;  %v463_v31 = vmul.f32 %v456_v27, %v87_v8  ;;  %v464_v32 = vmul.f32 %v456_v27, %v88_v62  ;;  %v509_v57 = vld [vmem:[%s1411_s3 + $0x10] sm:$0x1] }
  0x4b   :  { %v465_v40 = vadd.f32 %v457_v17, %v441_v13  ;;  %v466_v2 = vadd.f32 %v458_v18, %v442_v1  ;;  %v467_v3 = vadd.f32 %v459_v19, %v443_v14  ;;  %v468_v16 = vadd.f32 %v460_v20, %v444_v6 }
  0x4c   :  { %v469_v37 = vadd.f32 %v461_v29, %v445_v10  ;;  %v470_v27 = vadd.f32 %v462_v30, %v446_v11  ;;  %v471_v39 = vadd.f32 %v463_v31, %v447_v12  ;;  %v472_v15 = vadd.f32 %v464_v32, %v448_v4  ;;  %v512_v10 = vld [vmem:[%s1411_s3 + $0x13] sm:$0x1]  ;;  %v513_v11 = vld [vmem:[%s1411_s3 + $0x14] sm:$0x1]  ;;  %v514_v12 = vld [vmem:[%s1411_s3 + $0x15] sm:$0x1] }
  0x4d   :  { %v1250_v26 = vadd.f32 %v473_v21, %v465_v40  ;;  %v1252_v35 = vadd.f32 %v474_v22, %v466_v2  ;;  %v1254_v51 = vadd.f32 %v475_v46, %v467_v3  ;;  %v558_v58 = vcombine.low %v495_v24, %v496_v28  ;;  %v517_v29 = vld [vmem:[%s1411_s3 + $0x18] sm:$0x1]  ;;  %v518_v30 = vld [vmem:[%s1411_s3 + $0x19] sm:$0x1]  ;;  %v519_v28 = vld [vmem:[%s1411_s3 + $0x1a] sm:$0x1] }
  0x4e   :  { %v1268_v59 = vadd.f32 %v473_v21, %v469_v37  ;;  %v1270_v60 = vadd.f32 %v474_v22, %v470_v27  ;;  %v1272_v25 = vadd.f32 %v475_v46, %v471_v39  ;;  %v1283_v36 = vadd.f32 %v476_v41, %v468_v16  ;;  %v520_v40 = vld [vmem:[%s1411_s3 + $0x1b] sm:$0x1]  ;;  %v521_v2 = vld [vmem:[%s1411_s3 + $0x1c] sm:$0x1]  ;;  %v522_v27 = vld [vmem:[%s1411_s3 + $0x1d] sm:$0x1] }
  0x4f   :  { %v1285_v7 = vadd.f32 %v476_v41, %v472_v15  ;;  %v485_v54 = vmax.f32 %v1250_v26, 0.0  ;;  %v486_v55 = vmax.f32 %v1252_v35, 0.0  ;;  %v487_v8 = vmax.f32 %v1254_v51, 0.0  ;;  %v523_v39 = vld [vmem:[%s1411_s3 + $0x1e] sm:$0x1] }
  0x50   :  { %v489_v62 = vmax.f32 %v1268_v59, 0.0  ;;  %v490_v9 = vmax.f32 %v1270_v60, 0.0  ;;  %v491_v61 = vmax.f32 %v1272_v25, 0.0  ;;  %v559_v13 = vcombine.low %v497_v42, %v498_v43  ;;  %v524_v15 = vld [vmem:[%s1411_s3 + $0x1f] sm:$0x1] }
  0x51   :  { %v560_v1 = vcombine.low %v499_v44, %v500_v50  ;;  %v567_v14 = vrot.slane %v557_v38, %v1171_v52  ;;  %v574_v6 = vrot.slane %v558_v58, %v1171_v52  ;;  %v606_v4 = vcombine.low %v501_v45, %v502_v47 }
  0x52   :  { %v607_v17 = vcombine.low %v503_v48, %v504_v49  ;;  %v608_v18 = vcombine.low %v505_v53, %v506_v33  ;;  %v609_v19 = vcombine.low %v507_v34, %v508_v56  ;;  %v581_v38 = vrot.slane %v559_v13, %v1171_v52 }
  0x53   :  { %v588_v20 = vrot.slane %v560_v1, %v1171_v52  ;;  %v589_v21 = vcombine.low %v567_v14, %v574_v6  ;;  %v655_v22 = vcombine.low %v509_v57, %v510_v63  ;;  %v616_v31 = vrot.slane %v606_v4, %v1171_v52 }
  0x54   :  { %v623_v32 = vrot.slane %v607_v17, %v1171_v52  ;;  %v630_v46 = vrot.slane %v608_v18, %v1171_v52  ;;  %v637_v24 = vrot.slane %v609_v19, %v1171_v52  ;;  %v656_v41 = vcombine.low %v511_v0, %v512_v10 }
  0x55   :  { %v590_v3 = vcombine.low %v581_v38, %v588_v20  ;;  %v597_v16 = vrot.slane %v589_v21, %v1171_v52  ;;  %v657_v37 = vcombine.low %v513_v11, %v514_v12  ;;  %v658_v44 = vcombine.low %v515_v23, %v516_v5 }
  0x56   :  { %v638_v42 = vcombine.low %v616_v31, %v623_v32  ;;  %v639_v43 = vcombine.low %v630_v46, %v637_v24  ;;  %v665_v50 = vrot.slane %v655_v22, %v1171_v52  ;;  %v672_v47 = vrot.slane %v656_v41, %v1171_v52 }
  0x57   :  { %v604_v45 = vrot.slane %v590_v3, %v1171_v52  ;;  %v679_v48 = vrot.slane %v657_v37, %v1171_v52  ;;  %v704_v49 = vcombine.low %v517_v29, %v518_v30  ;;  %v686_v33 = vrot.slane %v658_v44, %v1171_v52 }
  0x58   :  { %v646_v58 = vrot.slane %v638_v42, %v1171_v52  ;;  %v653_v53 = vrot.slane %v639_v43, %v1171_v52  ;;  %v705_v34 = vcombine.low %v519_v28, %v520_v40  ;;  %v687_v57 = vcombine.low %v665_v50, %v672_v47  ;;  %v792_v42 = vld [vmem:[%s1412_s4] sm:$0x1] }
  0x59   :  { %v605_v56 = vcombine.low %v597_v16, %v604_v45  ;;  %v706_v63 = vcombine.low %v521_v2, %v522_v27  ;;  %v707_v0 = vcombine.low %v523_v39, %v524_v15  ;;  %v688_v1 = vcombine.low %v679_v48, %v686_v33 }
  0x5a   :  { %v654_v13 = vcombine.low %v646_v58, %v653_v53  ;;  %v714_v14 = vrot.slane %v704_v49, %v1171_v52  ;;  %v721_v6 = vrot.slane %v705_v34, %v1171_v52  ;;  %v695_v10 = vrot.slane %v687_v57, %v1171_v52 }
  0x5b   :  { %v728_v11 = vrot.slane %v706_v63, %v1171_v52  ;;  %v735_v12 = vrot.slane %v707_v0, %v1171_v52  ;;  %v757_v4 = vmul.f32 %v605_v56, %v485_v54  ;;  %v702_v17 = vrot.slane %v688_v1, %v1171_v52 }
  0x5c   :  { %v736_v18 = vcombine.low %v714_v14, %v721_v6  ;;  %v758_v19 = vmul.f32 %v654_v13, %v486_v55  ;;  %v761_v23 = vmul.f32 %v605_v56, %v489_v62  ;;  %v488_v5 = vmax.f32 %v1283_v36, 0.0 }
  0x5d   :  { %v737_v38 = vcombine.low %v728_v11, %v735_v12  ;;  %v762_v20 = vmul.f32 %v654_v13, %v490_v9  ;;  %v766_v21 = vsel %vm765_vm0, %v757_v4, 0.0  ;;  %v703_v22 = vcombine.low %v695_v10, %v702_v17 }
  0x5e   :  { %v744_v26 = vrot.slane %v736_v18, %v1171_v52  ;;  %v767_v54 = vsel %vm765_vm0, %v758_v19, 0.0  ;;  %v779_v29 = vsel %vm765_vm0, %v761_v23, 0.0  ;;  %v492_v35 = vmax.f32 %v1285_v7, 0.0 }
  0x5f   :  { %v751_v59 = vrot.slane %v737_v38, %v1171_v52  ;;  %v768_v55 = vadd.f32 %v767_v54, %v766_v21  ;;  %v780_v36 = vsel %vm765_vm0, %v762_v20, 0.0  ;;  %v759_v60 = vmul.f32 %v703_v22, %v487_v8 }
  0x60   :  { %v763_v62 = vmul.f32 %v703_v22, %v491_v61  ;;  %v781_v9 = vadd.f32 %v780_v36, %v779_v29 }
  0x61   :  { %v752_v30 = vcombine.low %v744_v26, %v751_v59  ;;  %v769_v31 = vsel %vm765_vm0, %v759_v60, 0.0 }
  0x62   :  { %v782_v32 = vsel %vm765_vm0, %v763_v62, 0.0  ;;  %v770_v7 = vadd.f32 %v769_v31, %v768_v55 }
  0x63   :  { %v760_v46 = vmul.f32 %v752_v30, %v488_v5  ;;  %v764_v24 = vmul.f32 %v752_v30, %v492_v35  ;;  %v783_v28 = vadd.f32 %v782_v32, %v781_v9 }
  0x65   :  { %v771_v52 = vsel %vm765_vm0, %v760_v46, 0.0  ;;  %v784_v40 = vsel %vm765_vm0, %v764_v24, 0.0 }
  0x66   :  { %v772_v2 = vadd.f32 %v771_v52, %v770_v7  ;;  %v785_v51 = vadd.f32 %v784_v40, %v783_v28 }
  0x68   :  { %v773_v8 = vrot.slane %v772_v2, 4  ;;  %v786_v3 = vrot.slane %v785_v51, 4 }
  0x6a   :  { %v774_v25 = vadd.f32 %v773_v8, %v772_v2  ;;  %v787_v61 = vadd.f32 %v786_v3, %v785_v51 }
  0x6c   :  { %v775_v16 = vrot.slane %v774_v25, 2  ;;  %v788_v41 = vrot.slane %v787_v61, 2 }
  0x6e   :  { %v776_v37 = vadd.f32 %v775_v16, %v774_v25  ;;  %v789_v27 = vadd.f32 %v788_v41, %v787_v61 }
  0x70   :  { %v777_v39 = vrot.slane %v776_v37, 1  ;;  %v790_v15 = vrot.slane %v789_v27, 1 }
  0x72   :  { %v778_v43 = vadd.f32 %v777_v39, %v776_v37  ;;  %v791_v44 = vadd.f32 %v790_v15, %v789_v27 }
  0x74   :  { %v793_v50 = vadd.f32 %v792_v42, %v778_v43  ;;  %v794_v45 = vadd.f32 %v792_v42, %v791_v44 }
  0x76   :  { %796 = vst.msk [vmem:[#allocation2] sm:$0x1] %vm795_vm1, %v793_v50  ;;  %797 = vst.msk [vmem:[#allocation2 + $0x1] sm:$0x1] %vm795_vm1, %v794_v45 }
  0x77   :  { %829 = shalt.err (!%p826_p4)
}
  0x78   :  { %s830_s4 = scalar_lea.hbm %s1413_s5, 32 }
  0x79   :  { %p831_p5 = scmp.ne.s32.totalorder %s1413_s5, %s830_s4  ;;  %p834_p6 = scmp.lt.u32.totalorder %s830_s4, %s1413_s5 }
  0x7b   :  { %p836_p7 = pnand %p834_p6, %p831_p5 }
  0x7d   :  { %839 = shalt.err (!%p836_p7)
}
  0x7e   :  { %s844_s23 = smov 16   ;;  %s845_s24 = smov 1  }
  0x7f   :  { %809 = dma.vmem_to_hbm [thread:$0]  %s804_s16, 32, %s1413_s5, [#allocation3], %s844_s23, %s844_s23, %s845_s24  }
  0x80   :  { %840 = dma.done.wait [#allocation3], 32  }
  0x81   :  { %841 = vsyncadd [#allocation3], 4294967264 }
  0x82   :  { %813 = vsyncpa [#allocation3], 1 }

</bundles_post_ra>
